<compile_context>
chip_gen: v7x
topology: tpu7x:2x2x1
jax: 0.10.0
libtpu: 0.0.40
codegen_flags: <defaults>
</compile_context>

<pallas_src>
import jax
import jax.numpy as jnp
from jax.experimental import pallas as pl
from jax.experimental.pallas import tpu as pltpu

HIDDEN = 8
MAX_TILE_ROWS = 1024      # 1024 sublane-rows x 128 lanes = 128K batch elements / grid step


def _xor_mlp_kernel(x_ref, w1_ref, b1_ref, w2_ref, b2_ref, o_ref):
    # x_ref : (D_in, TR, 128) VMEM, native dtype     w1_ref: (D_in, H)   SMEM f32
    # b1_ref: (H,)            SMEM f32               w2_ref: (H, D_out)  SMEM f32
    # b2_ref: (D_out,)        SMEM f32               o_ref : (D_out, TR, 128) VMEM f32
    d_in, hidden = w1_ref.shape
    d_out = w2_ref.shape[1]

    # In-kernel cast: x travels over HBM in its native dtype (feedback item 4).
    xs = [x_ref[k].astype(jnp.float32) for k in range(d_in)]      # D_in x (TR, 128)

    accs = [None] * d_out
    for j in range(hidden):                                       # static unroll, H = 8
        pre = xs[0] * w1_ref[0, j]                                 # scalar-broadcast FMA (VPU)
        for k in range(1, d_in):
            pre = pre + xs[k] * w1_ref[k, j]
        h = jnp.tanh(pre + b1_ref[j])                              # single EUP op
        for o in range(d_out):                                     # fused layer-2 accumulation
            t = h * w2_ref[j, o]
            accs[o] = t if accs[o] is None else accs[o] + t

    for o in range(d_out):
        o_ref[o] = jax.nn.sigmoid(accs[o] + b2_ref[o])             # dense (8,128) stores


def legacy_xor_forward(x, w1, b1, w2, b2, *, max_tile_rows=MAX_TILE_ROWS):
    """x: (B, D_in) any dtype; w1: (D_in, H); b1: (H,); w2: (H, D_out); b2: (D_out,).

    Returns (B, D_out) float32 == sigmoid(tanh(x.float() @ w1 + b1) @ w2 + b2).
    """
    B, d_in = x.shape
    hidden = w1.shape[1]
    d_out = w2.shape[1]

    if x.dtype == jnp.bool_:                       # widen bool once; other dtypes stay native
        x = x.astype(jnp.float32)

    # Single materialisation pass on x: pad batch to a 128-lane multiple (usually a no-op,
    # fused by XLA with the transpose) and put batch on the lane axis; trailing reshape is free.
    b128 = ((B + 127) // 128) * 128
    if b128 != B:
        x = jnp.pad(x, ((0, b128 - B), (0, 0)))
    r = b128 // 128
    x_t = x.T.reshape(d_in, r, 128)                # (D_in, R, 128), native dtype

    w1s = w1.astype(jnp.float32)                   # (D_in, H)   -> SMEM
    b1s = b1.astype(jnp.float32)                   # (H,)        -> SMEM
    w2s = w2.astype(jnp.float32)                   # (H, D_out)  -> SMEM
    b2s = b2.astype(jnp.float32)                   # (D_out,)    -> SMEM

    # Single full-dim block for small batches; otherwise 8-aligned big tiles with the
    # ragged final block clipped by Pallas (no tile-sized padding pass).
    tile_r = r if r <= max_tile_rows else max_tile_rows
    grid = pl.cdiv(r, tile_r)

    smem = pl.BlockSpec(memory_space=pltpu.MemorySpace.SMEM)
    out = pl.pallas_call(
        _xor_mlp_kernel,
        out_shape=jax.ShapeDtypeStruct((d_out, r, 128), jnp.float32),
        grid_spec=pltpu.PrefetchScalarGridSpec(
            num_scalar_prefetch=0,
            grid=(grid,),
            in_specs=[
                pl.BlockSpec((d_in, tile_r, 128), lambda i: (0, i, 0)),  # streamed x tiles
                smem, smem, smem, smem,                                   # resident params
            ],
            out_specs=pl.BlockSpec((d_out, tile_r, 128), lambda i: (0, i, 0)),
        ),
        compiler_params=pltpu.CompilerParams(
            dimension_semantics=("parallel",),     # batch tiles split across TCs (v7x)
        ),
    )(x_t, w1s, b1s, w2s, b2s)

    out_flat = out.reshape(d_out, r * 128)[:, :B]  # drop 128-pad lanes (no-op if aligned)
    return out_flat.T                              # (B, D_out); pure reshape for D_out == 1


def init_params(key, input_dim, output_dim, hidden=HIDDEN):
    # nn.Linear-style init: U(-1/sqrt(fan_in), 1/sqrt(fan_in)).
    k1, k2, k3, k4 = jax.random.split(key, 4)
    lim1 = 1.0 / jnp.sqrt(jnp.float32(input_dim))
    lim2 = 1.0 / jnp.sqrt(jnp.float32(hidden))
    w1 = jax.random.uniform(k1, (input_dim, hidden), jnp.float32, -lim1, lim1)
    b1 = jax.random.uniform(k2, (hidden,), jnp.float32, -lim1, lim1)
    w2 = jax.random.uniform(k3, (hidden, output_dim), jnp.float32, -lim2, lim2)
    b2 = jax.random.uniform(k4, (output_dim,), jnp.float32, -lim2, lim2)
    return w1, b1, w2, b2


def _reference(x, w1, b1, w2, b2):
    xf = x.astype(jnp.float32)
    return jax.nn.sigmoid(jnp.tanh(xf @ w1 + b1) @ w2 + b2)


if __name__ == "__main__":
    key = jax.random.PRNGKey(0)
    kx, kp = jax.random.split(key)

    batch, input_dim, output_dim = 8, 2, 1
    # XOR truth-table features, repeated to batch=8.
    xor_rows = jnp.array([[0, 0], [0, 1], [1, 0], [1, 1]], dtype=jnp.float32)
    x_small = jnp.tile(xor_rows, (batch // 4, 1))
    w1, b1, w2, b2 = init_params(kp, input_dim, output_dim)

    out_small = jax.block_until_ready(legacy_xor_forward(x_small, w1, b1, w2, b2))
    ref_small = _reference(x_small, w1, b1, w2, b2)
    assert out_small.shape == (batch, output_dim)
    assert jnp.allclose(out_small, ref_small, atol=1e-5), "small-batch mismatch vs reference"

    # Exercise the multi-tile grid + ragged clipped last block at small scale:
    # B=1300 -> 128-pad to 1408 -> R=11 rows; max_tile_rows=8 -> grid=2, last block clipped.
    big_batch = 1300
    x_big = jax.random.bernoulli(kx, 0.5, (big_batch, input_dim)).astype(jnp.float32)
    out_big = jax.block_until_ready(
        legacy_xor_forward(x_big, w1, b1, w2, b2, max_tile_rows=8))
    ref_big = _reference(x_big, w1, b1, w2, b2)
    assert out_big.shape == (big_batch, output_dim)
    assert jnp.allclose(out_big, ref_big, atol=1e-5), "large-batch mismatch vs reference"

    print("KERNEL_OK")
</pallas_src>

<mosaic_0001>
module attributes {stable_mosaic.version = 11 : i64} {
  func.func @_xor_mlp_kernel(%arg0: i32, %arg1: memref<2x1x128xf32, #tpu.memory_space<vmem>>, %arg2: memref<2x8xf32, #tpu.memory_space<smem>>, %arg3: memref<8xf32, #tpu.memory_space<smem>>, %arg4: memref<8x1xf32, #tpu.memory_space<smem>>, %arg5: memref<1xf32, #tpu.memory_space<smem>>, %arg6: memref<1x1x128xf32, #tpu.memory_space<vmem>>) attributes {dimension_semantics = [#tpu.dimension_semantics<parallel>], iteration_bounds = array<i64: 1>, scalar_prefetch = 0 : i64, scratch_operands = 0 : i64, tpu.core_type = #tpu.core_type<tc>, window_params = [{transform_indices = @transform_0, window_bounds = array<i64: 2, 1, 128>}, {transform_indices = @transform_1, window_bounds = array<i64: 2, 8>}, {transform_indices = @transform_2, window_bounds = array<i64: 8>}, {transform_indices = @transform_3, window_bounds = array<i64: 8, 1>}, {transform_indices = @transform_4, window_bounds = array<i64: 1>}, {transform_indices = @transform_5, window_bounds = array<i64: 1, 1, 128>}]} {
    %c0 = arith.constant 0 : index
    %c0_0 = arith.constant 0 : index
    %c0_1 = arith.constant 0 : index
    %0 = vector.load %arg1[%c0, %c0_0, %c0_1] : memref<2x1x128xf32, #tpu.memory_space<vmem>>, vector<1x1x128xf32>
    %1 = vector.shape_cast %0 : vector<1x1x128xf32> to vector<1x128xf32>
    %c1 = arith.constant 1 : index
    %c0_2 = arith.constant 0 : index
    %c0_3 = arith.constant 0 : index
    %2 = vector.load %arg1[%c1, %c0_2, %c0_3] : memref<2x1x128xf32, #tpu.memory_space<vmem>>, vector<1x1x128xf32>
    %3 = vector.shape_cast %2 : vector<1x1x128xf32> to vector<1x128xf32>
    %c0_4 = arith.constant 0 : index
    %c0_5 = arith.constant 0 : index
    %4 = memref.load %arg2[%c0_4, %c0_5] : memref<2x8xf32, #tpu.memory_space<smem>>
    %5 = vector.broadcast %4 : f32 to vector<1x128xf32>
    %6 = arith.mulf %1, %5 : vector<1x128xf32>
    %c1_6 = arith.constant 1 : index
    %c0_7 = arith.constant 0 : index
    %7 = memref.load %arg2[%c1_6, %c0_7] : memref<2x8xf32, #tpu.memory_space<smem>>
    %8 = vector.broadcast %7 : f32 to vector<1x128xf32>
    %9 = arith.mulf %3, %8 : vector<1x128xf32>
    %10 = arith.addf %6, %9 : vector<1x128xf32>
    %c0_8 = arith.constant 0 : index
    %11 = memref.load %arg3[%c0_8] : memref<8xf32, #tpu.memory_space<smem>>
    %12 = vector.broadcast %11 : f32 to vector<1x128xf32>
    %13 = arith.addf %10, %12 : vector<1x128xf32>
    %14 = math.tanh %13 : vector<1x128xf32>
    %c0_9 = arith.constant 0 : index
    %c0_10 = arith.constant 0 : index
    %15 = memref.load %arg4[%c0_9, %c0_10] : memref<8x1xf32, #tpu.memory_space<smem>>
    %16 = vector.broadcast %15 : f32 to vector<1x128xf32>
    %17 = arith.mulf %14, %16 : vector<1x128xf32>
    %c0_11 = arith.constant 0 : index
    %c1_12 = arith.constant 1 : index
    %18 = memref.load %arg2[%c0_11, %c1_12] : memref<2x8xf32, #tpu.memory_space<smem>>
    %19 = vector.broadcast %18 : f32 to vector<1x128xf32>
    %20 = arith.mulf %1, %19 : vector<1x128xf32>
    %c1_13 = arith.constant 1 : index
    %c1_14 = arith.constant 1 : index
    %21 = memref.load %arg2[%c1_13, %c1_14] : memref<2x8xf32, #tpu.memory_space<smem>>
    %22 = vector.broadcast %21 : f32 to vector<1x128xf32>
    %23 = arith.mulf %3, %22 : vector<1x128xf32>
    %24 = arith.addf %20, %23 : vector<1x128xf32>
    %c1_15 = arith.constant 1 : index
    %25 = memref.load %arg3[%c1_15] : memref<8xf32, #tpu.memory_space<smem>>
    %26 = vector.broadcast %25 : f32 to vector<1x128xf32>
    %27 = arith.addf %24, %26 : vector<1x128xf32>
    %28 = math.tanh %27 : vector<1x128xf32>
    %c1_16 = arith.constant 1 : index
    %c0_17 = arith.constant 0 : index
    %29 = memref.load %arg4[%c1_16, %c0_17] : memref<8x1xf32, #tpu.memory_space<smem>>
    %30 = vector.broadcast %29 : f32 to vector<1x128xf32>
    %31 = arith.mulf %28, %30 : vector<1x128xf32>
    %32 = arith.addf %17, %31 : vector<1x128xf32>
    %c0_18 = arith.constant 0 : index
    %c2 = arith.constant 2 : index
    %33 = memref.load %arg2[%c0_18, %c2] : memref<2x8xf32, #tpu.memory_space<smem>>
    %34 = vector.broadcast %33 : f32 to vector<1x128xf32>
    %35 = arith.mulf %1, %34 : vector<1x128xf32>
    %c1_19 = arith.constant 1 : index
    %c2_20 = arith.constant 2 : index
    %36 = memref.load %arg2[%c1_19, %c2_20] : memref<2x8xf32, #tpu.memory_space<smem>>
    %37 = vector.broadcast %36 : f32 to vector<1x128xf32>
    %38 = arith.mulf %3, %37 : vector<1x128xf32>
    %39 = arith.addf %35, %38 : vector<1x128xf32>
    %c2_21 = arith.constant 2 : index
    %40 = memref.load %arg3[%c2_21] : memref<8xf32, #tpu.memory_space<smem>>
    %41 = vector.broadcast %40 : f32 to vector<1x128xf32>
    %42 = arith.addf %39, %41 : vector<1x128xf32>
    %43 = math.tanh %42 : vector<1x128xf32>
    %c2_22 = arith.constant 2 : index
    %c0_23 = arith.constant 0 : index
    %44 = memref.load %arg4[%c2_22, %c0_23] : memref<8x1xf32, #tpu.memory_space<smem>>
    %45 = vector.broadcast %44 : f32 to vector<1x128xf32>
    %46 = arith.mulf %43, %45 : vector<1x128xf32>
    %47 = arith.addf %32, %46 : vector<1x128xf32>
    %c0_24 = arith.constant 0 : index
    %c3 = arith.constant 3 : index
    %48 = memref.load %arg2[%c0_24, %c3] : memref<2x8xf32, #tpu.memory_space<smem>>
    %49 = vector.broadcast %48 : f32 to vector<1x128xf32>
    %50 = arith.mulf %1, %49 : vector<1x128xf32>
    %c1_25 = arith.constant 1 : index
    %c3_26 = arith.constant 3 : index
    %51 = memref.load %arg2[%c1_25, %c3_26] : memref<2x8xf32, #tpu.memory_space<smem>>
    %52 = vector.broadcast %51 : f32 to vector<1x128xf32>
    %53 = arith.mulf %3, %52 : vector<1x128xf32>
    %54 = arith.addf %50, %53 : vector<1x128xf32>
    %c3_27 = arith.constant 3 : index
    %55 = memref.load %arg3[%c3_27] : memref<8xf32, #tpu.memory_space<smem>>
    %56 = vector.broadcast %55 : f32 to vector<1x128xf32>
    %57 = arith.addf %54, %56 : vector<1x128xf32>
    %58 = math.tanh %57 : vector<1x128xf32>
    %c3_28 = arith.constant 3 : index
    %c0_29 = arith.constant 0 : index
    %59 = memref.load %arg4[%c3_28, %c0_29] : memref<8x1xf32, #tpu.memory_space<smem>>
    %60 = vector.broadcast %59 : f32 to vector<1x128xf32>
    %61 = arith.mulf %58, %60 : vector<1x128xf32>
    %62 = arith.addf %47, %61 : vector<1x128xf32>
    %c0_30 = arith.constant 0 : index
    %c4 = arith.constant 4 : index
    %63 = memref.load %arg2[%c0_30, %c4] : memref<2x8xf32, #tpu.memory_space<smem>>
    %64 = vector.broadcast %63 : f32 to vector<1x128xf32>
    %65 = arith.mulf %1, %64 : vector<1x128xf32>
    %c1_31 = arith.constant 1 : index
    %c4_32 = arith.constant 4 : index
    %66 = memref.load %arg2[%c1_31, %c4_32] : memref<2x8xf32, #tpu.memory_space<smem>>
    %67 = vector.broadcast %66 : f32 to vector<1x128xf32>
    %68 = arith.mulf %3, %67 : vector<1x128xf32>
    %69 = arith.addf %65, %68 : vector<1x128xf32>
    %c4_33 = arith.constant 4 : index
    %70 = memref.load %arg3[%c4_33] : memref<8xf32, #tpu.memory_space<smem>>
    %71 = vector.broadcast %70 : f32 to vector<1x128xf32>
    %72 = arith.addf %69, %71 : vector<1x128xf32>
    %73 = math.tanh %72 : vector<1x128xf32>
    %c4_34 = arith.constant 4 : index
    %c0_35 = arith.constant 0 : index
    %74 = memref.load %arg4[%c4_34, %c0_35] : memref<8x1xf32, #tpu.memory_space<smem>>
    %75 = vector.broadcast %74 : f32 to vector<1x128xf32>
    %76 = arith.mulf %73, %75 : vector<1x128xf32>
    %77 = arith.addf %62, %76 : vector<1x128xf32>
    %c0_36 = arith.constant 0 : index
    %c5 = arith.constant 5 : index
    %78 = memref.load %arg2[%c0_36, %c5] : memref<2x8xf32, #tpu.memory_space<smem>>
    %79 = vector.broadcast %78 : f32 to vector<1x128xf32>
    %80 = arith.mulf %1, %79 : vector<1x128xf32>
    %c1_37 = arith.constant 1 : index
    %c5_38 = arith.constant 5 : index
    %81 = memref.load %arg2[%c1_37, %c5_38] : memref<2x8xf32, #tpu.memory_space<smem>>
    %82 = vector.broadcast %81 : f32 to vector<1x128xf32>
    %83 = arith.mulf %3, %82 : vector<1x128xf32>
    %84 = arith.addf %80, %83 : vector<1x128xf32>
    %c5_39 = arith.constant 5 : index
    %85 = memref.load %arg3[%c5_39] : memref<8xf32, #tpu.memory_space<smem>>
    %86 = vector.broadcast %85 : f32 to vector<1x128xf32>
    %87 = arith.addf %84, %86 : vector<1x128xf32>
    %88 = math.tanh %87 : vector<1x128xf32>
    %c5_40 = arith.constant 5 : index
    %c0_41 = arith.constant 0 : index
    %89 = memref.load %arg4[%c5_40, %c0_41] : memref<8x1xf32, #tpu.memory_space<smem>>
    %90 = vector.broadcast %89 : f32 to vector<1x128xf32>
    %91 = arith.mulf %88, %90 : vector<1x128xf32>
    %92 = arith.addf %77, %91 : vector<1x128xf32>
    %c0_42 = arith.constant 0 : index
    %c6 = arith.constant 6 : index
    %93 = memref.load %arg2[%c0_42, %c6] : memref<2x8xf32, #tpu.memory_space<smem>>
    %94 = vector.broadcast %93 : f32 to vector<1x128xf32>
    %95 = arith.mulf %1, %94 : vector<1x128xf32>
    %c1_43 = arith.constant 1 : index
    %c6_44 = arith.constant 6 : index
    %96 = memref.load %arg2[%c1_43, %c6_44] : memref<2x8xf32, #tpu.memory_space<smem>>
    %97 = vector.broadcast %96 : f32 to vector<1x128xf32>
    %98 = arith.mulf %3, %97 : vector<1x128xf32>
    %99 = arith.addf %95, %98 : vector<1x128xf32>
    %c6_45 = arith.constant 6 : index
    %100 = memref.load %arg3[%c6_45] : memref<8xf32, #tpu.memory_space<smem>>
    %101 = vector.broadcast %100 : f32 to vector<1x128xf32>
    %102 = arith.addf %99, %101 : vector<1x128xf32>
    %103 = math.tanh %102 : vector<1x128xf32>
    %c6_46 = arith.constant 6 : index
    %c0_47 = arith.constant 0 : index
    %104 = memref.load %arg4[%c6_46, %c0_47] : memref<8x1xf32, #tpu.memory_space<smem>>
    %105 = vector.broadcast %104 : f32 to vector<1x128xf32>
    %106 = arith.mulf %103, %105 : vector<1x128xf32>
    %107 = arith.addf %92, %106 : vector<1x128xf32>
    %c0_48 = arith.constant 0 : index
    %c7 = arith.constant 7 : index
    %108 = memref.load %arg2[%c0_48, %c7] : memref<2x8xf32, #tpu.memory_space<smem>>
    %109 = vector.broadcast %108 : f32 to vector<1x128xf32>
    %110 = arith.mulf %1, %109 : vector<1x128xf32>
    %c1_49 = arith.constant 1 : index
    %c7_50 = arith.constant 7 : index
    %111 = memref.load %arg2[%c1_49, %c7_50] : memref<2x8xf32, #tpu.memory_space<smem>>
    %112 = vector.broadcast %111 : f32 to vector<1x128xf32>
    %113 = arith.mulf %3, %112 : vector<1x128xf32>
    %114 = arith.addf %110, %113 : vector<1x128xf32>
    %c7_51 = arith.constant 7 : index
    %115 = memref.load %arg3[%c7_51] : memref<8xf32, #tpu.memory_space<smem>>
    %116 = vector.broadcast %115 : f32 to vector<1x128xf32>
    %117 = arith.addf %114, %116 : vector<1x128xf32>
    %118 = math.tanh %117 : vector<1x128xf32>
    %c7_52 = arith.constant 7 : index
    %c0_53 = arith.constant 0 : index
    %119 = memref.load %arg4[%c7_52, %c0_53] : memref<8x1xf32, #tpu.memory_space<smem>>
    %120 = vector.broadcast %119 : f32 to vector<1x128xf32>
    %121 = arith.mulf %118, %120 : vector<1x128xf32>
    %122 = arith.addf %107, %121 : vector<1x128xf32>
    %c0_54 = arith.constant 0 : index
    %123 = memref.load %arg5[%c0_54] : memref<1xf32, #tpu.memory_space<smem>>
    %124 = vector.broadcast %123 : f32 to vector<1x128xf32>
    %125 = arith.addf %122, %124 : vector<1x128xf32>
    %126 = arith.negf %125 : vector<1x128xf32>
    %127 = math.exp %126 : vector<1x128xf32>
    %cst = arith.constant 1.000000e+00 : f32
    %128 = vector.broadcast %cst : f32 to vector<1x128xf32>
    %129 = arith.addf %128, %127 : vector<1x128xf32>
    %130 = arith.divf %128, %129 : vector<1x128xf32>
    %c0_55 = arith.constant 0 : index
    %c0_56 = arith.constant 0 : index
    %c0_57 = arith.constant 0 : index
    %131 = vector.load %arg6[%c0_55, %c0_56, %c0_57] : memref<1x1x128xf32, #tpu.memory_space<vmem>>, vector<1x1x128xf32>
    %132 = vector.shape_cast %131 : vector<1x1x128xf32> to vector<1x128xf32>
    %133 = vector.shape_cast %130 : vector<1x128xf32> to vector<1x1x128xf32>
    tpu.vector_store %arg6[%c0_55, %c0_56, %c0_57], %133 {strides = array<i32>} : memref<1x1x128xf32, #tpu.memory_space<vmem>>, vector<1x1x128xf32>,
    return
  }
  func.func @transform_0(%arg0: i32) -> (i32, i32, i32) {
    %c0_i32 = arith.constant 0 : i32
    %c0_i32_0 = arith.constant 0 : i32
    %c0_i32_1 = arith.constant 0 : i32
    return %c0_i32, %arg0, %c0_i32_0 : i32, i32, i32
  }
  func.func @transform_1(%arg0: i32) -> (i32, i32) {
    %c0_i32 = arith.constant 0 : i32
    %c0_i32_0 = arith.constant 0 : i32
    %c0_i32_1 = arith.constant 0 : i32
    return %c0_i32, %c0_i32_0 : i32, i32
  }
  func.func @transform_2(%arg0: i32) -> i32 {
    %c0_i32 = arith.constant 0 : i32
    %c0_i32_0 = arith.constant 0 : i32
    return %c0_i32 : i32
  }
  func.func @transform_3(%arg0: i32) -> (i32, i32) {
    %c0_i32 = arith.constant 0 : i32
    %c0_i32_0 = arith.constant 0 : i32
    %c0_i32_1 = arith.constant 0 : i32
    return %c0_i32, %c0_i32_0 : i32, i32
  }
  func.func @transform_4(%arg0: i32) -> i32 {
    %c0_i32 = arith.constant 0 : i32
    %c0_i32_0 = arith.constant 0 : i32
    return %c0_i32 : i32
  }
  func.func @transform_5(%arg0: i32) -> (i32, i32, i32) {
    %c0_i32 = arith.constant 0 : i32
    %c0_i32_0 = arith.constant 0 : i32
    %c0_i32_1 = arith.constant 0 : i32
    return %c0_i32, %arg0, %c0_i32_0 : i32, i32, i32
  }
}

</mosaic_0001>

<bundles_post_ra>
// kernel: tpu_custom_call.1
= control target key start
LH: loop header
LB: loop body
LE: loop exit
PB: predicated region body
PF: predicated region fallthrough
CT: control target
= control target key end

     0   :  { %11 = vsyncpa [#allocation5], 0  ;;  %s478_s0 = inlined_call_operand.vmem [shape: f32[2,1,128], index: 0, kind: input, shape index: {}]   ;;  %s479_s1 = inlined_call_operand.vmem [shape: f32[2,8], index: 1, kind: input, shape index: {}]   ;;  %s480_s2 = inlined_call_operand.vmem [shape: f32[8], index: 2, kind: input, shape index: {}]   ;;  %s481_s3 = inlined_call_operand.vmem [shape: f32[8,1], index: 3, kind: input, shape index: {}]   ;;  %s482_s4 = inlined_call_operand.<no memory space> [shape: f32[1], index: 4, kind: input, shape index: {}]   ;;  %s483_s5 = inlined_call_operand.hbm [shape: f32[1,1,128], index: 5, kind: output, shape index: {}]  }
   0x1   :  { %12 = vsyncpa [#allocation7], 0  ;;  %s32_s20 = sshll.u32 %s480_s2, 4  ;;  %s33_s20 = int_to_ptr.vmem [resolvable:$true] %s32_s20 }
   0x2   :  { %13 = vsyncpa [#allocation4], 0  ;;  %s22_s23 = sshll.u32 %s479_s1, 4  ;;  %s261_s24 = scalar_lea.vmem %s33_s20, 16  ;;  %s23_s23 = int_to_ptr.vmem [resolvable:$true] %s22_s23 }
   0x3   :  { %p262_p0 = scmp.ne.s32.totalorder %s33_s20, %s261_s24  ;;  %p266_p1 = scmp.lt.s32.totalorder %s33_s20, %s33_s20 }
   0x4   :  { %p267_p2 = scmp.lt.s32.totalorder %s261_s24, %s261_s24 }
   0x6   :  { %p268_p3 = por %p267_p2, %p266_p1 }
   0x8   :  { %p269_p4 = pnand %p268_p3, %p262_p0 }
   0xa   :  { %272 = shalt.err (!%p269_p4)
}
   0xb   :  { %s325_s25 = smov [#allocation6]   ;;  %s273_s26 = scalar_lea.vmem %s23_s23, 32 }
   0xc   :  { %35 = dma.vmem_to_smem %s33_s20, 16, %s325_s25, [#allocation7]  }
   0xd   :  { %p274_p5 = scmp.ne.s32.totalorder %s23_s23, %s273_s26  ;;  %p278_p6 = scmp.lt.s32.totalorder %s23_s23, %s23_s23 }
   0xe   :  { %p279_p7 = scmp.lt.s32.totalorder %s273_s26, %s273_s26 }
  0x10   :  { %p280_p8 = por %p279_p7, %p278_p6 }
  0x12   :  { %p281_p9 = pnand %p280_p8, %p274_p5 }
  0x14   :  { %284 = shalt.err (!%p281_p9)
}
  0x15   :  { %s326_s2 = smov [#allocation3]   ;;  %s42_s28 = sshll.u32 %s481_s3, 4  ;;  %s43_s28 = int_to_ptr.vmem [resolvable:$true] %s42_s28 }
  0x16   :  { %25 = dma.vmem_to_smem %s23_s23, 32, %s326_s2, [#allocation5]  }
  0x17   :  { %s285_s29 = scalar_lea.vmem %s43_s28, 128  ;;  %p290_p11 = scmp.lt.s32.totalorder %s43_s28, %s43_s28 }
  0x18   :  { %p286_p10 = scmp.ne.s32.totalorder %s43_s28, %s285_s29  ;;  %p291_p12 = scmp.lt.s32.totalorder %s285_s29, %s285_s29 }
  0x1a   :  { %p292_p13 = por %p291_p12, %p290_p11 }
  0x1c   :  { %p293_p0 = pnand %p292_p13, %p286_p10 }
  0x1e   :  { %296 = shalt.err (!%p293_p0)
}
  0x1f   :  { %s327_s30 = smov [#allocation8]  }
  0x20   :  { %45 = dma.vmem_to_smem %s43_s28, 128, %s327_s30, [#allocation7]  }
  0x21   :  { %319 = dma.done.wait [#allocation5], 32  }
  0x22   :  { %320 = vsyncadd [#allocation5], 4294967264 }
  0x23   :  { %321 = dma.done.wait [#allocation7], 144  }
  0x24   :  { %322 = vsyncadd [#allocation7], 4294967152 }
  0x25   :  { %57 = sfence }
  0x26   :  { %s61_s6 = sld [smem:[#allocation3]]  ;;  %s208_s3 = sld [smem:[#allocation3 + $0x1]]  ;;  %v375_v0 = vld [vmem:[%s478_s0] sm:$0x1]  ;;  %v380_v1 = vld [vmem:[%s478_s0 + $0x1] sm:$0x1] }
  0x27   :  { %s207_s7 = sld [smem:[#allocation3 + $0x80]]  ;;  %s209_s9 = sld [smem:[#allocation3 + $0x81]] }
  0x28   :  { %s368_s8 = sld [smem:[#allocation6]]  ;;  %s370_s10 = sld [smem:[#allocation6 + $0x1]] }
  0x29   :  { %s212_s13 = sld [smem:[#allocation3 + $0x2]]  ;;  %s384_s18 = sld [smem:[#allocation3 + $0x3]] }
  0x2a   :  { %s213_s16 = sld [smem:[#allocation3 + $0x82]]  ;;  %s387_s19 = sld [smem:[#allocation3 + $0x83]] }
  0x2b   :  { %s382_s17 = sld [smem:[#allocation6 + $0x2]]  ;;  %s389_s20 = sld [smem:[#allocation6 + $0x3]] }
  0x2c   :  { %v62_v2 = vstv %s61_s6  ;;  %v76_v6 = vstv %s208_s3  ;;  %s392_s21 = sld [smem:[#allocation3 + $0x4]]  ;;  %s401_s23 = sld [smem:[#allocation3 + $0x5]] }
  0x2d   :  { %v63_v3 = vmul.f32 %v62_v2, %v375_v0  ;;  %v65_v4 = vstv %s207_s7  ;;  %v77_v8 = vmul.f32 %v76_v6, %v375_v0  ;;  %v79_v9 = vstv %s209_s9  ;;  %s396_s0 = sld [smem:[#allocation3 + $0x84]]  ;;  %s403_s24 = sld [smem:[#allocation8]] }
  0x2e   :  { %v66_v5 = vmul.f32 %v380_v1, %v65_v4  ;;  %v69_v7 = vstv %s368_s8  ;;  %s398_s22 = sld [smem:[#allocation6 + $0x4]]  ;;  %v80_v11 = vmul.f32 %v380_v1, %v79_v9  ;;  %v83_v13 = vstv %s370_s10  ;;  %s407_s25 = sld [smem:[#allocation3 + $0x85]] }
  0x2f   :  { %v91_v12 = vstv %s212_s13  ;;  %s410_s26 = sld [smem:[#allocation6 + $0x5]]  ;;  %s412_s2 = sld [smem:[#allocation3 + $0x6]]  ;;  %v106_v20 = vstv %s384_s18 }
  0x30   :  { %v67_v10 = vadd.f32 %v66_v5, %v63_v3  ;;  %v92_v14 = vmul.f32 %v91_v12, %v375_v0  ;;  %v94_v15 = vstv %s213_s16  ;;  %v81_v17 = vadd.f32 %v80_v11, %v77_v8  ;;  %s417_s1 = sld [smem:[#allocation3 + $0x86]]  ;;  %s422_s28 = sld [smem:[#allocation3 + $0x7]] }
  0x31   :  { %v95_v18 = vmul.f32 %v380_v1, %v94_v15  ;;  %v98_v19 = vstv %s382_s17  ;;  %v109_v21 = vstv %s387_s19  ;;  %v107_v24 = vmul.f32 %v106_v20, %v375_v0  ;;  %s420_s27 = sld [smem:[#allocation6 + $0x6]]  ;;  %s428_s29 = sld [smem:[#allocation3 + $0x87]] }
  0x32   :  { %v70_v16 = vadd.f32 %v69_v7, %v67_v10  ;;  %v84_v22 = vadd.f32 %v83_v13, %v81_v17  ;;  %v110_v25 = vmul.f32 %v380_v1, %v109_v21  ;;  %v113_v26 = vstv %s389_s20  ;;  %s430_s30 = sld [smem:[#allocation8 + $0x80]]  ;;  %s434_s6 = sld [smem:[#allocation6 + $0x7]] }
  0x33   :  { %v96_v23 = vadd.f32 %v95_v18, %v92_v14  ;;  %v121_v27 = vstv %s392_s21  ;;  %v124_v28 = vstv %s396_s0  ;;  %v136_v34 = vstv %s401_s23  ;;  %s438_s7 = sld [smem:[#allocation8 + $0x100]]  ;;  %s328_s14 = smov [#allocation9]  }
  0x34   :  { %241 = vtanh.f32 %v70_v16  ;;  %v122_v30 = vmul.f32 %v121_v27, %v375_v0  ;;  %v125_v31 = vmul.f32 %v380_v1, %v124_v28  ;;  %v111_v32 = vadd.f32 %v110_v25, %v107_v24  ;;  %s447_s8 = sld [smem:[#allocation8 + $0x180]]  ;;  %s196_s15 = sshll.u32 %s328_s14, 4  ;;  %s197_s15 = int_to_ptr.vmem [resolvable:$true] %s196_s15 }
  0x35   :  { %243 = vtanh.f32 %v84_v22  ;;  %v99_v29 = vadd.f32 %v98_v19, %v96_v23  ;;  %v128_v33 = vstv %s398_s22  ;;  %v137_v36 = vmul.f32 %v136_v34, %v375_v0  ;;  %s451_s3 = sld [smem:[#allocation8 + $0x200]]  ;;  %s297_s16 = scalar_lea.vmem %s197_s15, 16 }
  0x36   :  { %v126_v35 = vadd.f32 %v125_v31, %v122_v30  ;;  %v139_v37 = vstv %s407_s25  ;;  %v73_v38 = vstv %s403_s24  ;;  %v114_v39 = vadd.f32 %v113_v26, %v111_v32  ;;  %s227_s9 = sld [smem:[#allocation8 + $0x280]]  ;;  %p298_p1 = scmp.ne.s32.totalorder %s197_s15, %s297_s16 }
  0x37   :  { %245 = vtanh.f32 %v99_v29  ;;  %v140_v40 = vmul.f32 %v380_v1, %v139_v37  ;;  %v143_v42 = vstv %s410_s26  ;;  %v151_v43 = vstv %s412_s2  ;;  %s231_s10 = sld [smem:[#allocation8 + $0x300]]  ;;  %s301_s17 = scalar_lea.vmem %s197_s15, 32 }
  0x38   :  { %v129_v41 = vadd.f32 %v128_v33, %v126_v35  ;;  %v154_v44 = vstv %s417_s1  ;;  %247 = vtanh.f32 %v114_v39  ;;  %v152_v46 = vmul.f32 %v151_v43, %v375_v0  ;;  %s235_s11 = sld [smem:[#allocation8 + $0x380]]  ;;  %p302_p2 = scmp.lt.s32.totalorder %s197_s15, %s197_s15 }
  0x39   :  { %v141_v45 = vadd.f32 %v140_v40, %v137_v36  ;;  %v155_v47 = vmul.f32 %v380_v1, %v154_v44  ;;  %v158_v48 = vstv %s420_s27  ;;  %v166_v49 = vstv %s422_s28  ;;  %p303_p3 = scmp.lt.s32.totalorder %s301_s17, %s297_s16 }
  0x3a   :  { %249 = vtanh.f32 %v129_v41  ;;  %v169_v50 = vstv %s428_s29  ;;  %v167_v53 = vmul.f32 %v166_v49, %v375_v0  ;;  %v87_v56 = vstv %s430_s30 }
  0x3b   :  { %v144_v51 = vadd.f32 %v143_v42, %v141_v45  ;;  %v156_v52 = vadd.f32 %v155_v47, %v152_v46  ;;  %v170_v54 = vmul.f32 %v380_v1, %v169_v50  ;;  %v173_v57 = vstv %s434_s6  ;;  %p304_p4 = por %p303_p3, %p302_p2 }
  0x3c   :  { %v102_v62 = vstv %s438_s7  ;;  %v117_v1 = vstv %s447_s8  ;;  %v132_v5 = vstv %s451_s3  ;;  %v147_v11 = vstv %s227_s9 }
  0x3d   :  { %251 = vtanh.f32 %v144_v51  ;;  %v159_v59 = vadd.f32 %v158_v48, %v156_v52  ;;  %v171_v60 = vadd.f32 %v170_v54, %v167_v53  ;;  %v162_v14 = vstv %s231_s10  ;;  %p305_p5 = pnand %p304_p4, %p298_p1 }
  0x3e   :  { %v242_v55 = vpop.eup %241  ;;  %v177_v18 = vstv %s235_s11  ;;  %v181_v24 = vstv %s482_s4 }
  0x3f   :  { %v74_v58 = vmul.f32 %v242_v55, %v73_v38  ;;  %v244_v61 = vpop.eup %243  ;;  %253 = vtanh.f32 %v159_v59  ;;  %v174_v2 = vadd.f32 %v173_v57, %v171_v60 }
  0x40   :  { %v88_v63 = vmul.f32 %v244_v61, %v87_v56 }
  0x41   :  { %v246_v3 = vpop.eup %245  ;;  %255 = vtanh.f32 %v174_v2 }
  0x42   :  { %v89_v0 = vadd.f32 %v88_v63, %v74_v58  ;;  %v103_v4 = vmul.f32 %v246_v3, %v102_v62  ;;  %v248_v6 = vpop.eup %247 }
  0x43   :  { %v118_v9 = vmul.f32 %v248_v6, %v117_v1 }
  0x44   :  { %v104_v7 = vadd.f32 %v103_v4, %v89_v0  ;;  %v250_v8 = vpop.eup %249 }
  0x45   :  { %v133_v10 = vmul.f32 %v250_v8, %v132_v5 }
  0x46   :  { %v119_v12 = vadd.f32 %v118_v9, %v104_v7 }
  0x47   :  { %v252_v13 = vpop.eup %251 }
  0x48   :  { %v134_v15 = vadd.f32 %v133_v10, %v119_v12  ;;  %v148_v16 = vmul.f32 %v252_v13, %v147_v11 }
  0x49   :  { %v254_v17 = vpop.eup %253 }
  0x4a   :  { %v149_v19 = vadd.f32 %v148_v16, %v134_v15  ;;  %v163_v20 = vmul.f32 %v254_v17, %v162_v14 }
  0x4b   :  { %v256_v21 = vpop.eup %255 }
  0x4c   :  { %v164_v22 = vadd.f32 %v163_v20, %v149_v19  ;;  %v178_v23 = vmul.f32 %v256_v21, %v177_v18 }
  0x4e   :  { %v179_v25 = vadd.f32 %v178_v23, %v164_v22 }
  0x50   :  { %v182_v26 = vadd.f32 %v181_v24, %v179_v25 }
  0x52   :  { %v236_v27 = vmul.f32 -1.442695, %v182_v26 }
  0x54   :  { %257 = vpow2.f32 %v236_v27 }
  0x5e   :  { %v258_v28 = vpop.eup %257 }
  0x5f   :  { %v186_v29 = vadd.f32 1.0, %v258_v28 }
  0x61   :  { %259 = vrcp.f32 %v186_v29 }
  0x6b   :  { %v260_v30 = vpop.eup %259 }
  0x6c   :  { %189 = vst [vmem:[#allocation9] sm:$0x1] %v260_v30 }
  0x6d   :  { %308 = shalt.err (!%p305_p5)
}
  0x6e   :  { %s309_s19 = scalar_lea.hbm %s483_s5, 16 }
  0x6f   :  { %p310_p6 = scmp.ne.s32.totalorder %s483_s5, %s309_s19  ;;  %p313_p7 = scmp.lt.u32.totalorder %s309_s19, %s483_s5 }
  0x71   :  { %p315_p8 = pnand %p313_p7, %p310_p6 }
  0x73   :  { %318 = shalt.err (!%p315_p8)
}
  0x74   :  { %199 = dma.vmem_to_hbm [thread:$0]  %s197_s15, 16, %s483_s5, [#allocation4]  }
  0x75   :  { %323 = dma.done.wait [#allocation4], 16  }
  0x76   :  { %324 = vsyncadd [#allocation4], 4294967280 }
  0x77   :  { %203 = vsyncpa [#allocation4], 1 }
  0x78   :  { %204 = vsyncpa [#allocation5], 1 }
  0x79   :  { %205 = vsyncpa [#allocation7], 1 }

</bundles_post_ra>
